<compile_context>
chip_gen: v5e
topology: v5e:2x2
jax: 0.10.0
libtpu: 0.0.40
codegen_flags: <defaults>
</compile_context>

<pallas_src>
import jax
import jax.numpy as jnp
from jax.experimental import pallas as pl
from jax.experimental.pallas import tpu as pltpu


def _focus_conv_kernel(w_ref, b_ref, x_ref, o_ref):
    # w_ref: (C2, K)      BN-scale-folded 1x1 conv weight (compute dtype)
    # b_ref: (C2, 1)      folded BN bias (f32)
    # x_ref: (K, TILE_M)  space-to-depth input tile, pixels on the lane axis
    # o_ref: (C2, TILE_M) output tile (NCHW-flattened)
    y = jnp.dot(w_ref[...], x_ref[...], preferred_element_type=jnp.float32)
    y = y + b_ref[...]
    # Hardswish: y * relu6(y + 3) / 6
    y = y * jnp.clip(y + 3.0, 0.0, 6.0) * (1.0 / 6.0)
    o_ref[...] = y.astype(o_ref.dtype)


def focus_forward(x, w_mat, gamma, beta, running_mean, running_var,
                  eps=1e-5, compute_dtype=jnp.bfloat16, tile_m=2048):
    """x: (N, c1, H, W) NCHW.  w_mat: (4*c1, c2) (PyTorch concat order)."""
    N, C1, H, W = x.shape
    assert H % 2 == 0 and W % 2 == 0
    H2, W2 = H // 2, W // 2
    K = 4 * C1
    C2 = w_mat.shape[1]
    Ms = H2 * W2

    # --- Space-to-depth as a single fused shuffle, matching torch.cat order
    #     [even-H even-W, odd-H even-W, even-H odd-W, odd-H odd-W].
    #     Result layout is (N, K, H2*W2): channels-first, so no extra
    #     channels-last transpose is needed before/after the matmul.
    xr = x.reshape(N, C1, H2, 2, W2, 2)                       # (..., hoff, W2, woff)
    xc = jnp.transpose(xr, (0, 5, 3, 1, 2, 4)).reshape(N, K, Ms)
    # TODO(synk): fuse this gather into the kernel's own DMA (raw NCHW input
    # with memory_space=pl.ANY + strided copies) to save one HBM round trip.

    # --- Fold BatchNorm (inference) into the weight / a per-channel bias ---
    scale = gamma / jnp.sqrt(running_var + eps)                       # (C2,)
    bias = (beta - running_mean * scale).reshape(C2, 1).astype(jnp.float32)
    w_lhs = (w_mat * scale[None, :]).T.astype(compute_dtype)          # (C2, K)

    xc = xc.astype(compute_dtype)

    # --- Tile the pixel dimension (kept on the lane axis) ---
    if Ms <= tile_m:
        tm = Ms                                  # full dim -> always legal
    else:
        tm = tile_m                              # multiple of 128
        pad = (-Ms) % tm
        if pad:
            xc = jnp.pad(xc, ((0, 0), (0, 0), (0, pad)))
    Mp = xc.shape[-1]
    num_m = Mp // tm

    cost = pl.CostEstimate(
        flops=2 * N * Ms * K * C2,
        transcendentals=0,
        bytes_accessed=(xc.size * xc.dtype.itemsize
                        + w_lhs.size * w_lhs.dtype.itemsize
                        + N * C2 * Mp * x.dtype.itemsize))

    out = pl.pallas_call(
        _focus_conv_kernel,
        out_shape=jax.ShapeDtypeStruct((N, C2, Mp), x.dtype),
        grid=(N, num_m),
        in_specs=[
            pl.BlockSpec((C2, K), lambda n, m: (0, 0)),        # weight (resident)
            pl.BlockSpec((C2, 1), lambda n, m: (0, 0)),        # bias   (resident)
            pl.BlockSpec((None, K, tm), lambda n, m: (n, 0, m)),
        ],
        out_specs=pl.BlockSpec((None, C2, tm), lambda n, m: (n, 0, m)),
        compiler_params=pltpu.CompilerParams(
            dimension_semantics=("parallel", "parallel")),
        cost_estimate=cost,
    )(w_lhs, bias, xc)

    # Output is already (N, C2, M) in NCHW order; just drop M padding + reshape.
    return out[:, :, :Ms].reshape(N, C2, H2, W2)


def focus_reference(x, w_mat, gamma, beta, running_mean, running_var, eps=1e-5):
    """Pure-JAX f32 reference for correctness check."""
    parts = [x[:, :, ::2, ::2], x[:, :, 1::2, ::2],
             x[:, :, ::2, 1::2], x[:, :, 1::2, 1::2]]
    xc = jnp.concatenate(parts, axis=1)                       # (N, 4*c1, H2, W2)
    y = jnp.einsum('nchw,cd->ndhw', xc, w_mat)                # 1x1 conv
    scale = gamma / jnp.sqrt(running_var + eps)
    bias = beta - running_mean * scale
    y = y * scale[None, :, None, None] + bias[None, :, None, None]
    return y * jnp.clip(y + 3.0, 0.0, 6.0) / 6.0


if __name__ == "__main__":
    key = jax.random.PRNGKey(0)
    k_x, k_w, k_g, k_b, k_m, k_v = jax.random.split(key, 6)

    N, c1, H, W = 2, 4, 16, 16
    c2 = 8

    x = jax.random.normal(k_x, (N, c1, H, W), dtype=jnp.float32)

    # Conv2d(c1*4, c2, k=1, bias=False) weight: (c2, 4*c1, 1, 1) in PyTorch.
    # Stored here directly as the equivalent (4*c1, c2) matmul matrix.
    w_pt = 0.1 * jax.random.normal(k_w, (c2, 4 * c1, 1, 1), dtype=jnp.float32)
    w_mat = jnp.transpose(w_pt[:, :, 0, 0], (1, 0))           # (4*c1, c2)

    # BatchNorm2d(c2) parameters (deterministic, inference mode).
    gamma = 1.0 + 0.1 * jax.random.normal(k_g, (c2,), dtype=jnp.float32)
    beta = 0.1 * jax.random.normal(k_b, (c2,), dtype=jnp.float32)
    running_mean = 0.1 * jax.random.normal(k_m, (c2,), dtype=jnp.float32)
    running_var = 1.0 + 0.1 * jax.random.uniform(k_v, (c2,), dtype=jnp.float32)

    out = focus_forward(x, w_mat, gamma, beta, running_mean, running_var)
    out = jax.block_until_ready(out)

    ref = focus_reference(x, w_mat, gamma, beta, running_mean, running_var)
    assert out.shape == (N, c2, H // 2, W // 2), out.shape
    # bf16 matmul inputs vs f32 reference -> loosened tolerance.
    assert jnp.allclose(out, ref, atol=2e-2, rtol=2e-2), float(
        jnp.max(jnp.abs(out - ref)))

    print("KERNEL_OK")
</pallas_src>

<mosaic_0001>
module attributes {stable_mosaic.version = 11 : i64} {
  func.func @_focus_conv_kernel(%arg0: i32, %arg1: i32, %arg2: memref<8x16xbf16, #tpu.memory_space<vmem>>, %arg3: memref<8x1xf32, #tpu.memory_space<vmem>>, %arg4: memref<1x16x64xbf16, #tpu.memory_space<vmem>>, %arg5: memref<1x8x64xf32, #tpu.memory_space<vmem>>) attributes {dimension_semantics = [#tpu.dimension_semantics<parallel>, #tpu.dimension_semantics<parallel>], iteration_bounds = array<i64: 2, 1>, scalar_prefetch = 0 : i64, scratch_operands = 0 : i64, tpu.core_type = #tpu.core_type<tc>, window_params = [{pipeline_mode = #tpu.pipeline_mode<synchronous>, transform_indices = @transform_0, window_bounds = array<i64: 8, 16>}, {pipeline_mode = #tpu.pipeline_mode<synchronous>, transform_indices = @transform_1, window_bounds = array<i64: 8, 1>}, {transform_indices = @transform_2, window_bounds = array<i64: 1, 16, 64>}, {transform_indices = @transform_3, window_bounds = array<i64: 1, 8, 64>}]} {
    %c0 = arith.constant 0 : index
    %c0_0 = arith.constant 0 : index
    %0 = vector.load %arg2[%c0, %c0_0] : memref<8x16xbf16, #tpu.memory_space<vmem>>, vector<8x16xbf16>
    %c0_1 = arith.constant 0 : index
    %c0_2 = arith.constant 0 : index
    %c0_3 = arith.constant 0 : index
    %1 = vector.load %arg4[%c0_1, %c0_2, %c0_3] : memref<1x16x64xbf16, #tpu.memory_space<vmem>>, vector<1x16x64xbf16>
    %2 = vector.shape_cast %1 : vector<1x16x64xbf16> to vector<16x64xbf16>
    %cst = arith.constant dense<0.000000e+00> : vector<8x64xf32>
    %3 = tpu.matmul %0, %2, %cst {dimension_numbers = #tpu.dot_dimension_numbers<[1], [0], [0], [1], [0, 0, 1, 1], [], []>} : vector<8x16xbf16>, vector<16x64xbf16>, vector<8x64xf32> -> vector<8x64xf32>
    %c0_4 = arith.constant 0 : index
    %c0_5 = arith.constant 0 : index
    %4 = vector.load %arg3[%c0_4, %c0_5] : memref<8x1xf32, #tpu.memory_space<vmem>>, vector<8x1xf32>
    %5 = vector.broadcast %4 : vector<8x1xf32> to vector<8x64xf32>
    %6 = arith.addf %3, %5 : vector<8x64xf32>
    %cst_6 = arith.constant 3.000000e+00 : f32
    %7 = vector.broadcast %cst_6 : f32 to vector<8x64xf32>
    %8 = arith.addf %6, %7 : vector<8x64xf32>
    %cst_7 = arith.constant 0.000000e+00 : f32
    %cst_8 = arith.constant 6.000000e+00 : f32
    %9 = vector.broadcast %cst_7 : f32 to vector<8x64xf32>
    %10 = arith.maximumf %9, %8 : vector<8x64xf32>
    %11 = vector.broadcast %cst_8 : f32 to vector<8x64xf32>
    %12 = arith.minimumf %11, %10 : vector<8x64xf32>
    %13 = arith.mulf %6, %12 : vector<8x64xf32>
    %cst_9 = arith.constant 0.166666672 : f32
    %14 = vector.broadcast %cst_9 : f32 to vector<8x64xf32>
    %15 = arith.mulf %13, %14 : vector<8x64xf32>
    %c0_10 = arith.constant 0 : index
    %c0_11 = arith.constant 0 : index
    %c0_12 = arith.constant 0 : index
    %16 = vector.load %arg5[%c0_10, %c0_11, %c0_12] : memref<1x8x64xf32, #tpu.memory_space<vmem>>, vector<1x8x64xf32>
    %17 = vector.shape_cast %16 : vector<1x8x64xf32> to vector<8x64xf32>
    %18 = vector.shape_cast %15 : vector<8x64xf32> to vector<1x8x64xf32>
    tpu.vector_store %arg5[%c0_10, %c0_11, %c0_12], %18 {strides = array<i32>} : memref<1x8x64xf32, #tpu.memory_space<vmem>>, vector<1x8x64xf32>,
    return
  }
  func.func @transform_0(%arg0: i32, %arg1: i32) -> (i32, i32) {
    %c0_i32 = arith.constant 0 : i32
    %c0_i32_0 = arith.constant 0 : i32
    %c0_i32_1 = arith.constant 0 : i32
    return %c0_i32, %c0_i32_0 : i32, i32
  }
  func.func @transform_1(%arg0: i32, %arg1: i32) -> (i32, i32) {
    %c0_i32 = arith.constant 0 : i32
    %c0_i32_0 = arith.constant 0 : i32
    %c0_i32_1 = arith.constant 0 : i32
    return %c0_i32, %c0_i32_0 : i32, i32
  }
  func.func @transform_2(%arg0: i32, %arg1: i32) -> (i32, i32, i32) {
    %c0_i32 = arith.constant 0 : i32
    %c0_i32_0 = arith.constant 0 : i32
    return %arg0, %c0_i32, %arg1 : i32, i32, i32
  }
  func.func @transform_3(%arg0: i32, %arg1: i32) -> (i32, i32, i32) {
    %c0_i32 = arith.constant 0 : i32
    %c0_i32_0 = arith.constant 0 : i32
    return %arg0, %c0_i32, %arg1 : i32, i32, i32
  }
}

</mosaic_0001>

<bundles_post_ra>
// kernel: tpu_custom_call.1
= control target key start
LH: loop header
LB: loop body
LE: loop exit
PB: predicated region body
PF: predicated region fallthrough
CT: control target
= control target key end

     0   :  { %8 = vsyncpa [#allocation3], 0  ;;  %s696_s0 = inlined_call_operand.vmem [shape: bf16[8,16], index: 0, kind: input, shape index: {}]   ;;  %s697_s1 = inlined_call_operand.vmem [shape: f32[8,1], index: 1, kind: input, shape index: {}]   ;;  %s698_s2 = inlined_call_operand.hbm [shape: bf16[2,16,64], index: 2, kind: input, shape index: {}]   ;;  %s699_s3 = inlined_call_operand.hbm [shape: f32[2,8,64], index: 3, kind: output, shape index: {}]  }
   0x1   :  { %10 = vsyncpa [#allocation3 + $0x1], 0 }
   0x2   :  { %11 = vsyncpa [#allocation4], 0 }
   0x3   :  { %13 = vsyncpa [#allocation4 + $0x1], 0  ;;  %s570_s12 = smov 0   ;;  %s572_s13 = smov 0  }
   0x4   :  { %s574_s14 = smov 0   ;;  %s576_s15 = smov 0  }
   0x5   :  { %s578_s16 = smov 0   ;;  %s580_s17 = smov 0  }
   0x6 LB: > { %s346_s18 = sadd.s32 4294967295, %s545_s17   ;;  %s347_s19 = sadd.s32 4294967294, %s545_s17   ;;  %s545_s17 = sphi %s580_s17, %s19_s17   ;;  %s541_s16 = sphi %s578_s16, %s708_s16   ;;  %s537_s15 = sphi %s576_s15, %s707_s15   ;;  %s533_s14 = sphi %s574_s14, %s706_s14   ;;  %s529_s13 = sphi %s572_s13, %s705_s13   ;;  %s525_s12 = sphi %s570_s12, %s704_s12  }
   0x7   : > { %s31_s20 = sadd.s32 1, %s541_s16  ;;  %s82_s21 = sadd.s32 1, %s533_s14 }
   0x8   : > { %p33_p0 = scmp.ge.s32.totalorder %s31_s20, 2  ;;  %p89_p1 = scmp.ne.s32.totalorder %s533_s14, %s529_s13 }
   0x9   : > { %p90_p2 = scmp.eq.s32.totalorder %s545_s17, 0  ;;  %p95_p3 = scmp.ne.s32.totalorder %s529_s13, %s525_s12 }
   0xa   : > { %s710_s20 = smov (%p33_p0, %s31_s20), 0  ;;  %p96_p5 = scmp.eq.s32.totalorder %s346_s18, 0 }
   0xb   : > { %p611_p4 = por %p90_p2, %p89_p1  ;;  %s77_s23 = ssub.s32 %s541_s16, %s710_s20 }
   0xc   : > { %p121_p6 = scmp.eq.s32.totalorder %s346_s18, 1  ;;  %p80_p7 = scmp.eq.s32.totalorder %s77_s23, 0 }
   0xd   : > { %p617_p8 = por %p96_p5, %p95_p3  ;;  %p127_p10 = scmp.eq.s32.totalorder %s347_s19, 1 }
   0xe   : > { %p621_p9 = por %p121_p6, %p89_p1  ;;  %p349_p12 = scmp.ge.s32.totalorder %s545_s17, 2 }
   0xf   : > { %s626_s26 = scalar_select %p80_p7, %s533_s14, %s82_s21  }
  0x10   : > { %p628_p11 = por %p127_p10, %p95_p3  ;;  %p379_p13 = scmp.lt.s32.totalorder %s545_s17, 2 }
  0x11   : > { %s153_s28 = sand.u32 1, %s533_s14   ;;  %s365_s30 = sshll.u32 %s541_s16, 3 }
  0x12   : > { %s350_s29 = sshll.u32 %s153_s28, 3  ;;  %s163_s6 = scalar_lea.hbm %s698_s2, %s365_s30 }
  0x13   : > { %s157_s7 = scalar_lea.vmem [#allocation2], %s350_s29  ;;  %s164_s9 = sshll.u32 %s163_s6, 4  ;;  %s165_s9 = int_to_ptr.hbm [resolvable:$true] %s164_s9 }
  0x14   : > { %s166_s8 = sshll.u32 %s157_s7, 4  ;;  %p372_p0 = pnand %p379_p13, %p611_p4  ;;  %s167_s8 = int_to_ptr.vmem [resolvable:$true] %s166_s8 }
  0x15   : > { %p353_p1 = scmp.ge.s32.totalorder %s545_s17, 1  ;;  %s154_s10 = scalar_lea.sflag [#allocation3], %s153_s28 }
  0x16   : > { %s547_s11 = smov 64   ;;  %s548_s18 = smov 4  }
  0x17   : > { %374 = dma.hbm_to_vmem [thread:$0]  (!%p372_p0), %s165_s9, 128, %s167_s8, %s154_s10, %s547_s11, %s547_s11, %s548_s18  }
  0x18   : > { %p174_p2 = scmp.lt.s32.totalorder %s545_s17, 3 }
  0x1a   : > { %p175_p3 = pnand %p353_p1, %p174_p2 }
  0x1b   : > { %s644_s19 = sand.u32 (!%p175_p3), 1, %s529_s13  }
  0x1c   : > { %178 = sbr.rel (%p175_p3) target bundleno = 179 (0xb3), region = 32  ;;  %s354_s21 = sshll.u32 (!%p175_p3), %s644_s19, 3 }
  0x1d   : > { %s181_s23 = scalar_lea.sflag (!%p175_p3), [#allocation3], %s644_s19  ;;  %s184_s29 = scalar_lea.vmem (!%p175_p3), [#allocation2], %s354_s21 }
  0x21   : > { %516 = dma.done.wait (%p617_p8), %s181_s23, 128  }
  0x22   : > { %518 = vsyncadd (%p617_p8), %s181_s23, 4294967168  ;;  %v549_v0 = vmov 0   ;;  %v366_v1 = vld [vmem:[%s184_s29] sm:$0xff]  ;;  %vm224_vm0 = vcmask 130048   ;;  %s362_s24 = sshll.u32 %s537_s15, 3  ;;  %s207_s8 = scalar_lea.vmem [#allocation5], %s354_s21 }
  0x23   : > { %432 = vset.pattern.permute.xlu0 %v549_v0  ;;  %v212_v2 = vld [vmem:[%s697_s1] sm:$0xff]  ;;  %235 = vmatpush.bf16.msra.mxu0 %v366_v1  ;;  %s260_s7 = scalar_lea.hbm %s699_s3, %s362_s24  ;;  %s262_s9 = sshll.u32 %s207_s8, 4  ;;  %vm246_vm1 = vcmask 523264   ;;  %s263_s9 = int_to_ptr.vmem [resolvable:$true] %s262_s9 }
  0x24   : > { %215 = vperm.xlu0 %432, %v212_v2   ;;  %v209_v3 = vld [vmem:[%s696_s0] sm:$0xf]  ;;  %s264_s10 = sshll.u32 %s260_s7, 4  ;;  %s249_s11 = scalar_lea.sflag [#allocation4], %s644_s19  ;;  %s265_s10 = int_to_ptr.hbm [resolvable:$true] %s264_s10 }
  0x25   : > { %s477_s15 = sshra.s32 %s265_s10, 4  ;;  %s483_s21 = scalar_lea.hbm %s699_s3, 16  ;;  %s478_s15 = int_to_ptr.hbm [resolvable:$true] %s477_s15 }
  0x26   : > { %360 = vmatmul.msk.bf16.vlgmr.msra.gmra.mxu0 %vm224_vm0, %v209_v3  ;;  %s479_s18 = scalar_lea.hbm %s478_s15, 8  ;;  %p484_p7 = scmp.lt.s32.totalorder %s478_s15, %s699_s3 }
  0x27   : > { %p480_p4 = scmp.ne.s32.totalorder %s478_s15, %s479_s18  ;;  %p485_p8 = scmp.lt.s32.totalorder %s483_s21, %s479_s18 }
  0x29   : > { %p481_p5 = pnand %p480_p4, %p621_p9  ;;  %p486_p10 = por %p485_p8, %p484_p7 }
  0x2b   : > { %p482_p6 = pneg %p481_p5 }
  0x2d   : > { %p487_p13 = pnand %p486_p10, %p482_p6 }
  0x96   : > { %v216_v4 = vpop.permute.xlu0 %215 }
  0xa3   : > { %v237_v5 = vpop.f32.mrf.mxu0 }
  0xa4   : > { %v238_v6 = vadd.f32 %v237_v5, %v216_v4 }
  0xa6   : > { %v241_v7 = vadd.f32 3.0, %v238_v6 }
  0xa8   : > { %v242_v8 = vmax.f32 %v241_v7, 0.0 }
  0xaa   : > { %v243_v9 = vmin.f32 %v242_v8, 6.0 }
  0xab   : > { %v239_v10 = vpop.f32.mrf.mxu0 }
  0xac   : > { %v244_v11 = vmul.f32 %v243_v9, %v238_v6 }
  0xae   : > { %v245_v12 = vmul.f32 0.16666667, %v244_v11 }
  0xb0   : > { %247 = vst.msk [vmem:[%s207_s8] sm:$0xff] %vm246_vm1, %v245_v12 }
  0xb1   : > { %490 = shalt.err (!%p487_p13)
}
  0xb2   : > { %369 = dma.vmem_to_hbm [thread:$0]  (%p621_p9), %s263_s9, 128, %s265_s10, %s249_s11  }
  0xb3 PF: > { %s276_s19 = sand.u32 1, %s525_s12   ;;  %p376_p0 = pnand %p349_p12, %p628_p11 }
  0xb4   : > { %s277_s30 = scalar_lea.sflag [#allocation4], %s276_s19 }
  0xb5   : > { %p377_p1 = pneg %p376_p0 }
  0xb7   : > { %520 = dma.done.wait (%p377_p1), %s277_s30, 128  }
  0xb8   : > { %522 = vsyncadd (%p377_p1), %s277_s30, 4294967168  ;;  %s19_s17 = sadd.s32 1, %s545_s17   ;;  %s704_s12 = smov %s529_s13 }
  0xb9   : > { %p16_p2 = scmp.ge.s32.totalorder %s19_s17, 4   ;;  %s705_s13 = smov %s533_s14 }
  0xba   : > { %s706_s14 = smov %s626_s26  ;;  %s707_s15 = smov %s541_s16 }
  0xbb   : > { %s708_s16 = smov %s710_s20  ;;  %18 = sbr.rel (!%p16_p2) target bundleno = 6 (0x6), region = 77 }
  0xc0   :  { %283 = vsyncpa [#allocation3], 1 }
  0xc1   :  { %285 = vsyncpa [#allocation3 + $0x1], 1 }
  0xc2   :  { %286 = vsyncpa [#allocation4], 1 }
  0xc3   :  { %288 = vsyncpa [#allocation4 + $0x1], 1 }

</bundles_post_ra>
